<compile_context>
chip_gen: v5e
topology: v5e:2x2
jax: 0.10.0
libtpu: 0.0.40
codegen_flags: <defaults>
</compile_context>

<pallas_src>
import jax
import jax.numpy as jnp
from jax.experimental import pallas as pl
from jax.experimental.pallas import tpu as pltpu


_MAX_BT = 16384          # default max batch-tile (rows); multiple of 128
_VMEM_LIMIT = 32 * 1024 * 1024


def _round_up(n, m):
    return ((n + m - 1) // m) * m


def _dense_fm(x_fm, w_t, b_col):
    """Feature-major dense layer on the VPU.

    x_fm : (K, BT)  activations, batch on lanes (lane-dense)
    w_t  : (N, K)   weights in PyTorch (out, in) layout
    b_col: (N, 1)   bias column
    returns (N, BT)

    Statically unrolled over K: K broadcast-FMAs onto a dense (N, BT)
    accumulator; bias is the accumulator init.  No MXU, no MRF round-trip.
    """
    acc = b_col + w_t[:, 0:1] * x_fm[0:1, :]
    for k in range(1, x_fm.shape[0]):
        acc = acc + w_t[:, k:k + 1] * x_fm[k:k + 1, :]
    return acc


def actor_kernel(x_ref, w1_ref, b1_ref, w2_ref, b2_ref, w3_ref, b3_ref, out_ref):
    x = x_ref[...]                                            # (4,  BT) f32
    h1 = jnp.maximum(_dense_fm(x, w1_ref[...], b1_ref[...]), 0.0)    # (16, BT)
    h2 = jnp.maximum(_dense_fm(h1, w2_ref[...], b2_ref[...]), 0.0)   # (16, BT)
    z = _dense_fm(h2, w3_ref[...], b3_ref[...])                      # (2,  BT)

    # Numerically stable 100*sigmoid: clamp avoids exp overflow for large
    # negative logits; reciprocal is exact (the epilogue is tiny: (2, BT)).
    z = jnp.clip(z, -30.0, 30.0)
    out_ref[...] = 100.0 * pl.reciprocal(1.0 + jnp.exp(-z), approx=False)


def actor_forward(state, params, bankrupt=False, block_batch=None):
    """state: (B, 4) float32 -> (B, 2) float32 in [0, 100]."""
    if bankrupt:
        # Mirrors `return torch.tensor([0.0, 0.0])` in the reference module.
        # TODO(synk): this (2,)-shaped early return is inconsistent with the
        # (B, 2) normal path, exactly as in the PyTorch module.
        return jnp.zeros((2,), dtype=jnp.float32)

    w1, b1, w2, b2, w3, b3 = params
    state = state.astype(jnp.float32)
    B = state.shape[0]

    # --- choose the batch tile (lane dim -> multiple of 128) ---------------
    if block_batch is None:
        ntiles = pl.cdiv(B, _MAX_BT)
        if ntiles == 1 and B >= 4096:
            ntiles = 2               # give both v7x TensorCores work
        BT = _round_up(pl.cdiv(B, ntiles), 128)
    else:
        BT = _round_up(block_batch, 128)
    padded_B = _round_up(B, BT)
    grid = (padded_B // BT,)

    # Feature-major input (4, padded_B); the pad fuses with the transpose
    # pass, so there is no standalone pad over HBM.
    state_t = state.T
    if padded_B != B:
        state_t = jnp.pad(state_t, ((0, 0), (0, padded_B - B)))

    b1c = b1.reshape(-1, 1)
    b2c = b2.reshape(-1, 1)
    b3c = b3.reshape(-1, 1)

    out = pl.pallas_call(
        actor_kernel,
        out_shape=jax.ShapeDtypeStruct((2, padded_B), jnp.float32),
        grid=grid,
        in_specs=[
            # Batch-tiled, lane-dense activation input (double-buffered).
            pl.BlockSpec((4, BT), lambda i: (0, i)),
            # Weights / biases: full-array blocks, constant index_map ->
            # resident in VMEM across all grid iterations.
            pl.BlockSpec((16, 4), lambda i: (0, 0)),
            pl.BlockSpec((16, 1), lambda i: (0, 0)),
            pl.BlockSpec((16, 16), lambda i: (0, 0)),
            pl.BlockSpec((16, 1), lambda i: (0, 0)),
            pl.BlockSpec((2, 16), lambda i: (0, 0)),
            pl.BlockSpec((2, 1), lambda i: (0, 0)),
        ],
        # Lane-dense output tile -> unmasked full-width stores.
        out_specs=pl.BlockSpec((2, BT), lambda i: (0, i)),
        compiler_params=pltpu.CompilerParams(
            dimension_semantics=("parallel",),
            vmem_limit_bytes=_VMEM_LIMIT,
        ),
    )(state_t, w1, b1c, w2, b2c, w3, b3c)

    # Un-pad + transpose back (fuses into one tiny pass).
    return out[:, :B].T


def init_params(key):
    """PyTorch-convention shapes: weight (out, in), bias (out,)."""
    k1, k2, k3, k4, k5, k6 = jax.random.split(key, 6)
    w1 = jax.random.normal(k1, (16, 4), jnp.float32) * 0.5
    b1 = jax.random.normal(k2, (16,), jnp.float32) * 0.1
    w2 = jax.random.normal(k3, (16, 16), jnp.float32) * 0.25
    b2 = jax.random.normal(k4, (16,), jnp.float32) * 0.1
    w3 = jax.random.normal(k5, (2, 16), jnp.float32) * 0.25
    b3 = jax.random.normal(k6, (2,), jnp.float32) * 0.1
    return (w1, b1, w2, b2, w3, b3)


def actor_reference(state, params):
    """Pure-JAX reference (exact sigmoid) for correctness checking."""
    w1, b1, w2, b2, w3, b3 = params
    h1 = jnp.maximum(state @ w1.T + b1, 0.0)
    h2 = jnp.maximum(h1 @ w2.T + b2, 0.0)
    return 100.0 * jax.nn.sigmoid(h2 @ w3.T + b3)


if __name__ == "__main__":
    key = jax.random.PRNGKey(0)
    pkey, xkey, xkey2 = jax.random.split(key, 3)

    params = init_params(pkey)

    # Small canonical test: batch=8, state dim=4.
    state = jax.random.normal(xkey, (8, 4), jnp.float32)
    out = jax.block_until_ready(actor_forward(state, params))
    ref = actor_reference(state, params)
    assert out.shape == (8, 2), out.shape
    assert out.dtype == jnp.float32
    assert jnp.allclose(out, ref, atol=1e-3, rtol=1e-4), (out, ref)
    assert bool(jnp.all((out >= 0.0) & (out <= 100.0)))

    # Exercise the multi-step grid + ragged batch (pad fused with transpose).
    state2 = jax.random.normal(xkey2, (300, 4), jnp.float32)
    out2 = jax.block_until_ready(actor_forward(state2, params, block_batch=128))
    ref2 = actor_reference(state2, params)
    assert out2.shape == (300, 2), out2.shape
    assert jnp.allclose(out2, ref2, atol=1e-3, rtol=1e-4)

    # Default tile-selection path on the same ragged batch.
    out3 = jax.block_until_ready(actor_forward(state2, params))
    assert jnp.allclose(out3, ref2, atol=1e-3, rtol=1e-4)

    # Bankrupt branch mirrors the PyTorch constant return.
    bz = actor_forward(state, params, bankrupt=True)
    assert bz.shape == (2,) and bool(jnp.all(bz == 0.0))

    print("KERNEL_OK")
</pallas_src>

<mosaic_0001>
module attributes {stable_mosaic.version = 11 : i64} {
  func.func @actor_kernel(%arg0: i32, %arg1: memref<4x128xf32, #tpu.memory_space<vmem>>, %arg2: memref<16x4xf32, #tpu.memory_space<vmem>>, %arg3: memref<16x1xf32, #tpu.memory_space<vmem>>, %arg4: memref<16x16xf32, #tpu.memory_space<vmem>>, %arg5: memref<16x1xf32, #tpu.memory_space<vmem>>, %arg6: memref<2x16xf32, #tpu.memory_space<vmem>>, %arg7: memref<2x1xf32, #tpu.memory_space<vmem>>, %arg8: memref<2x128xf32, #tpu.memory_space<vmem>>) attributes {dimension_semantics = [#tpu.dimension_semantics<parallel>], iteration_bounds = array<i64: 1>, scalar_prefetch = 0 : i64, scratch_operands = 0 : i64, tpu.core_type = #tpu.core_type<tc>, window_params = [{transform_indices = @transform_0, window_bounds = array<i64: 4, 128>}, {pipeline_mode = #tpu.pipeline_mode<synchronous>, transform_indices = @transform_1, window_bounds = array<i64: 16, 4>}, {pipeline_mode = #tpu.pipeline_mode<synchronous>, transform_indices = @transform_2, window_bounds = array<i64: 16, 1>}, {pipeline_mode = #tpu.pipeline_mode<synchronous>, transform_indices = @transform_3, window_bounds = array<i64: 16, 16>}, {pipeline_mode = #tpu.pipeline_mode<synchronous>, transform_indices = @transform_4, window_bounds = array<i64: 16, 1>}, {pipeline_mode = #tpu.pipeline_mode<synchronous>, transform_indices = @transform_5, window_bounds = array<i64: 2, 16>}, {pipeline_mode = #tpu.pipeline_mode<synchronous>, transform_indices = @transform_6, window_bounds = array<i64: 2, 1>}, {transform_indices = @transform_7, window_bounds = array<i64: 2, 128>}]} {
    %c0 = arith.constant 0 : index
    %c0_0 = arith.constant 0 : index
    %0 = vector.load %arg1[%c0, %c0_0] : memref<4x128xf32, #tpu.memory_space<vmem>>, vector<4x128xf32>
    %c0_1 = arith.constant 0 : index
    %c0_2 = arith.constant 0 : index
    %1 = vector.load %arg2[%c0_1, %c0_2] : memref<16x4xf32, #tpu.memory_space<vmem>>, vector<16x4xf32>
    %c0_3 = arith.constant 0 : index
    %c0_4 = arith.constant 0 : index
    %2 = vector.load %arg3[%c0_3, %c0_4] : memref<16x1xf32, #tpu.memory_space<vmem>>, vector<16x1xf32>
    %3 = vector.extract_strided_slice %1 {offsets = [0, 0], sizes = [16, 1], strides = [1, 1]} : vector<16x4xf32> to vector<16x1xf32>
    %4 = vector.extract_strided_slice %0 {offsets = [0, 0], sizes = [1, 128], strides = [1, 1]} : vector<4x128xf32> to vector<1x128xf32>
    %5 = vector.broadcast %3 : vector<16x1xf32> to vector<16x128xf32>
    %6 = vector.broadcast %4 : vector<1x128xf32> to vector<16x128xf32>
    %7 = arith.mulf %5, %6 : vector<16x128xf32>
    %8 = vector.broadcast %2 : vector<16x1xf32> to vector<16x128xf32>
    %9 = arith.addf %8, %7 : vector<16x128xf32>
    %10 = vector.extract_strided_slice %1 {offsets = [0, 1], sizes = [16, 1], strides = [1, 1]} : vector<16x4xf32> to vector<16x1xf32>
    %11 = vector.extract_strided_slice %0 {offsets = [1, 0], sizes = [1, 128], strides = [1, 1]} : vector<4x128xf32> to vector<1x128xf32>
    %12 = vector.broadcast %10 : vector<16x1xf32> to vector<16x128xf32>
    %13 = vector.broadcast %11 : vector<1x128xf32> to vector<16x128xf32>
    %14 = arith.mulf %12, %13 : vector<16x128xf32>
    %15 = arith.addf %9, %14 : vector<16x128xf32>
    %16 = vector.extract_strided_slice %1 {offsets = [0, 2], sizes = [16, 1], strides = [1, 1]} : vector<16x4xf32> to vector<16x1xf32>
    %17 = vector.extract_strided_slice %0 {offsets = [2, 0], sizes = [1, 128], strides = [1, 1]} : vector<4x128xf32> to vector<1x128xf32>
    %18 = vector.broadcast %16 : vector<16x1xf32> to vector<16x128xf32>
    %19 = vector.broadcast %17 : vector<1x128xf32> to vector<16x128xf32>
    %20 = arith.mulf %18, %19 : vector<16x128xf32>
    %21 = arith.addf %15, %20 : vector<16x128xf32>
    %22 = vector.extract_strided_slice %1 {offsets = [0, 3], sizes = [16, 1], strides = [1, 1]} : vector<16x4xf32> to vector<16x1xf32>
    %23 = vector.extract_strided_slice %0 {offsets = [3, 0], sizes = [1, 128], strides = [1, 1]} : vector<4x128xf32> to vector<1x128xf32>
    %24 = vector.broadcast %22 : vector<16x1xf32> to vector<16x128xf32>
    %25 = vector.broadcast %23 : vector<1x128xf32> to vector<16x128xf32>
    %26 = arith.mulf %24, %25 : vector<16x128xf32>
    %27 = arith.addf %21, %26 : vector<16x128xf32>
    %cst = arith.constant 0.000000e+00 : f32
    %28 = vector.broadcast %cst : f32 to vector<16x128xf32>
    %29 = arith.maximumf %27, %28 : vector<16x128xf32>
    %c0_5 = arith.constant 0 : index
    %c0_6 = arith.constant 0 : index
    %30 = vector.load %arg4[%c0_5, %c0_6] : memref<16x16xf32, #tpu.memory_space<vmem>>, vector<16x16xf32>
    %c0_7 = arith.constant 0 : index
    %c0_8 = arith.constant 0 : index
    %31 = vector.load %arg5[%c0_7, %c0_8] : memref<16x1xf32, #tpu.memory_space<vmem>>, vector<16x1xf32>
    %32 = vector.extract_strided_slice %30 {offsets = [0, 0], sizes = [16, 1], strides = [1, 1]} : vector<16x16xf32> to vector<16x1xf32>
    %33 = vector.extract_strided_slice %29 {offsets = [0, 0], sizes = [1, 128], strides = [1, 1]} : vector<16x128xf32> to vector<1x128xf32>
    %34 = vector.broadcast %32 : vector<16x1xf32> to vector<16x128xf32>
    %35 = vector.broadcast %33 : vector<1x128xf32> to vector<16x128xf32>
    %36 = arith.mulf %34, %35 : vector<16x128xf32>
    %37 = vector.broadcast %31 : vector<16x1xf32> to vector<16x128xf32>
    %38 = arith.addf %37, %36 : vector<16x128xf32>
    %39 = vector.extract_strided_slice %30 {offsets = [0, 1], sizes = [16, 1], strides = [1, 1]} : vector<16x16xf32> to vector<16x1xf32>
    %40 = vector.extract_strided_slice %29 {offsets = [1, 0], sizes = [1, 128], strides = [1, 1]} : vector<16x128xf32> to vector<1x128xf32>
    %41 = vector.broadcast %39 : vector<16x1xf32> to vector<16x128xf32>
    %42 = vector.broadcast %40 : vector<1x128xf32> to vector<16x128xf32>
    %43 = arith.mulf %41, %42 : vector<16x128xf32>
    %44 = arith.addf %38, %43 : vector<16x128xf32>
    %45 = vector.extract_strided_slice %30 {offsets = [0, 2], sizes = [16, 1], strides = [1, 1]} : vector<16x16xf32> to vector<16x1xf32>
    %46 = vector.extract_strided_slice %29 {offsets = [2, 0], sizes = [1, 128], strides = [1, 1]} : vector<16x128xf32> to vector<1x128xf32>
    %47 = vector.broadcast %45 : vector<16x1xf32> to vector<16x128xf32>
    %48 = vector.broadcast %46 : vector<1x128xf32> to vector<16x128xf32>
    %49 = arith.mulf %47, %48 : vector<16x128xf32>
    %50 = arith.addf %44, %49 : vector<16x128xf32>
    %51 = vector.extract_strided_slice %30 {offsets = [0, 3], sizes = [16, 1], strides = [1, 1]} : vector<16x16xf32> to vector<16x1xf32>
    %52 = vector.extract_strided_slice %29 {offsets = [3, 0], sizes = [1, 128], strides = [1, 1]} : vector<16x128xf32> to vector<1x128xf32>
    %53 = vector.broadcast %51 : vector<16x1xf32> to vector<16x128xf32>
    %54 = vector.broadcast %52 : vector<1x128xf32> to vector<16x128xf32>
    %55 = arith.mulf %53, %54 : vector<16x128xf32>
    %56 = arith.addf %50, %55 : vector<16x128xf32>
    %57 = vector.extract_strided_slice %30 {offsets = [0, 4], sizes = [16, 1], strides = [1, 1]} : vector<16x16xf32> to vector<16x1xf32>
    %58 = vector.extract_strided_slice %29 {offsets = [4, 0], sizes = [1, 128], strides = [1, 1]} : vector<16x128xf32> to vector<1x128xf32>
    %59 = vector.broadcast %57 : vector<16x1xf32> to vector<16x128xf32>
    %60 = vector.broadcast %58 : vector<1x128xf32> to vector<16x128xf32>
    %61 = arith.mulf %59, %60 : vector<16x128xf32>
    %62 = arith.addf %56, %61 : vector<16x128xf32>
    %63 = vector.extract_strided_slice %30 {offsets = [0, 5], sizes = [16, 1], strides = [1, 1]} : vector<16x16xf32> to vector<16x1xf32>
    %64 = vector.extract_strided_slice %29 {offsets = [5, 0], sizes = [1, 128], strides = [1, 1]} : vector<16x128xf32> to vector<1x128xf32>
    %65 = vector.broadcast %63 : vector<16x1xf32> to vector<16x128xf32>
    %66 = vector.broadcast %64 : vector<1x128xf32> to vector<16x128xf32>
    %67 = arith.mulf %65, %66 : vector<16x128xf32>
    %68 = arith.addf %62, %67 : vector<16x128xf32>
    %69 = vector.extract_strided_slice %30 {offsets = [0, 6], sizes = [16, 1], strides = [1, 1]} : vector<16x16xf32> to vector<16x1xf32>
    %70 = vector.extract_strided_slice %29 {offsets = [6, 0], sizes = [1, 128], strides = [1, 1]} : vector<16x128xf32> to vector<1x128xf32>
    %71 = vector.broadcast %69 : vector<16x1xf32> to vector<16x128xf32>
    %72 = vector.broadcast %70 : vector<1x128xf32> to vector<16x128xf32>
    %73 = arith.mulf %71, %72 : vector<16x128xf32>
    %74 = arith.addf %68, %73 : vector<16x128xf32>
    %75 = vector.extract_strided_slice %30 {offsets = [0, 7], sizes = [16, 1], strides = [1, 1]} : vector<16x16xf32> to vector<16x1xf32>
    %76 = vector.extract_strided_slice %29 {offsets = [7, 0], sizes = [1, 128], strides = [1, 1]} : vector<16x128xf32> to vector<1x128xf32>
    %77 = vector.broadcast %75 : vector<16x1xf32> to vector<16x128xf32>
    %78 = vector.broadcast %76 : vector<1x128xf32> to vector<16x128xf32>
    %79 = arith.mulf %77, %78 : vector<16x128xf32>
    %80 = arith.addf %74, %79 : vector<16x128xf32>
    %81 = vector.extract_strided_slice %30 {offsets = [0, 8], sizes = [16, 1], strides = [1, 1]} : vector<16x16xf32> to vector<16x1xf32>
    %82 = vector.extract_strided_slice %29 {offsets = [8, 0], sizes = [1, 128], strides = [1, 1]} : vector<16x128xf32> to vector<1x128xf32>
    %83 = vector.broadcast %81 : vector<16x1xf32> to vector<16x128xf32>
    %84 = vector.broadcast %82 : vector<1x128xf32> to vector<16x128xf32>
    %85 = arith.mulf %83, %84 : vector<16x128xf32>
    %86 = arith.addf %80, %85 : vector<16x128xf32>
    %87 = vector.extract_strided_slice %30 {offsets = [0, 9], sizes = [16, 1], strides = [1, 1]} : vector<16x16xf32> to vector<16x1xf32>
    %88 = vector.extract_strided_slice %29 {offsets = [9, 0], sizes = [1, 128], strides = [1, 1]} : vector<16x128xf32> to vector<1x128xf32>
    %89 = vector.broadcast %87 : vector<16x1xf32> to vector<16x128xf32>
    %90 = vector.broadcast %88 : vector<1x128xf32> to vector<16x128xf32>
    %91 = arith.mulf %89, %90 : vector<16x128xf32>
    %92 = arith.addf %86, %91 : vector<16x128xf32>
    %93 = vector.extract_strided_slice %30 {offsets = [0, 10], sizes = [16, 1], strides = [1, 1]} : vector<16x16xf32> to vector<16x1xf32>
    %94 = vector.extract_strided_slice %29 {offsets = [10, 0], sizes = [1, 128], strides = [1, 1]} : vector<16x128xf32> to vector<1x128xf32>
    %95 = vector.broadcast %93 : vector<16x1xf32> to vector<16x128xf32>
    %96 = vector.broadcast %94 : vector<1x128xf32> to vector<16x128xf32>
    %97 = arith.mulf %95, %96 : vector<16x128xf32>
    %98 = arith.addf %92, %97 : vector<16x128xf32>
    %99 = vector.extract_strided_slice %30 {offsets = [0, 11], sizes = [16, 1], strides = [1, 1]} : vector<16x16xf32> to vector<16x1xf32>
    %100 = vector.extract_strided_slice %29 {offsets = [11, 0], sizes = [1, 128], strides = [1, 1]} : vector<16x128xf32> to vector<1x128xf32>
    %101 = vector.broadcast %99 : vector<16x1xf32> to vector<16x128xf32>
    %102 = vector.broadcast %100 : vector<1x128xf32> to vector<16x128xf32>
    %103 = arith.mulf %101, %102 : vector<16x128xf32>
    %104 = arith.addf %98, %103 : vector<16x128xf32>
    %105 = vector.extract_strided_slice %30 {offsets = [0, 12], sizes = [16, 1], strides = [1, 1]} : vector<16x16xf32> to vector<16x1xf32>
    %106 = vector.extract_strided_slice %29 {offsets = [12, 0], sizes = [1, 128], strides = [1, 1]} : vector<16x128xf32> to vector<1x128xf32>
    %107 = vector.broadcast %105 : vector<16x1xf32> to vector<16x128xf32>
    %108 = vector.broadcast %106 : vector<1x128xf32> to vector<16x128xf32>
    %109 = arith.mulf %107, %108 : vector<16x128xf32>
    %110 = arith.addf %104, %109 : vector<16x128xf32>
    %111 = vector.extract_strided_slice %30 {offsets = [0, 13], sizes = [16, 1], strides = [1, 1]} : vector<16x16xf32> to vector<16x1xf32>
    %112 = vector.extract_strided_slice %29 {offsets = [13, 0], sizes = [1, 128], strides = [1, 1]} : vector<16x128xf32> to vector<1x128xf32>
    %113 = vector.broadcast %111 : vector<16x1xf32> to vector<16x128xf32>
    %114 = vector.broadcast %112 : vector<1x128xf32> to vector<16x128xf32>
    %115 = arith.mulf %113, %114 : vector<16x128xf32>
    %116 = arith.addf %110, %115 : vector<16x128xf32>
    %117 = vector.extract_strided_slice %30 {offsets = [0, 14], sizes = [16, 1], strides = [1, 1]} : vector<16x16xf32> to vector<16x1xf32>
    %118 = vector.extract_strided_slice %29 {offsets = [14, 0], sizes = [1, 128], strides = [1, 1]} : vector<16x128xf32> to vector<1x128xf32>
    %119 = vector.broadcast %117 : vector<16x1xf32> to vector<16x128xf32>
    %120 = vector.broadcast %118 : vector<1x128xf32> to vector<16x128xf32>
    %121 = arith.mulf %119, %120 : vector<16x128xf32>
    %122 = arith.addf %116, %121 : vector<16x128xf32>
    %123 = vector.extract_strided_slice %30 {offsets = [0, 15], sizes = [16, 1], strides = [1, 1]} : vector<16x16xf32> to vector<16x1xf32>
    %124 = vector.extract_strided_slice %29 {offsets = [15, 0], sizes = [1, 128], strides = [1, 1]} : vector<16x128xf32> to vector<1x128xf32>
    %125 = vector.broadcast %123 : vector<16x1xf32> to vector<16x128xf32>
    %126 = vector.broadcast %124 : vector<1x128xf32> to vector<16x128xf32>
    %127 = arith.mulf %125, %126 : vector<16x128xf32>
    %128 = arith.addf %122, %127 : vector<16x128xf32>
    %cst_9 = arith.constant 0.000000e+00 : f32
    %129 = vector.broadcast %cst_9 : f32 to vector<16x128xf32>
    %130 = arith.maximumf %128, %129 : vector<16x128xf32>
    %c0_10 = arith.constant 0 : index
    %c0_11 = arith.constant 0 : index
    %131 = vector.load %arg6[%c0_10, %c0_11] : memref<2x16xf32, #tpu.memory_space<vmem>>, vector<2x16xf32>
    %c0_12 = arith.constant 0 : index
    %c0_13 = arith.constant 0 : index
    %132 = vector.load %arg7[%c0_12, %c0_13] : memref<2x1xf32, #tpu.memory_space<vmem>>, vector<2x1xf32>
    %133 = vector.extract_strided_slice %131 {offsets = [0, 0], sizes = [2, 1], strides = [1, 1]} : vector<2x16xf32> to vector<2x1xf32>
    %134 = vector.extract_strided_slice %130 {offsets = [0, 0], sizes = [1, 128], strides = [1, 1]} : vector<16x128xf32> to vector<1x128xf32>
    %135 = vector.broadcast %133 : vector<2x1xf32> to vector<2x128xf32>
    %136 = vector.broadcast %134 : vector<1x128xf32> to vector<2x128xf32>
    %137 = arith.mulf %135, %136 : vector<2x128xf32>
    %138 = vector.broadcast %132 : vector<2x1xf32> to vector<2x128xf32>
    %139 = arith.addf %138, %137 : vector<2x128xf32>
    %140 = vector.extract_strided_slice %131 {offsets = [0, 1], sizes = [2, 1], strides = [1, 1]} : vector<2x16xf32> to vector<2x1xf32>
    %141 = vector.extract_strided_slice %130 {offsets = [1, 0], sizes = [1, 128], strides = [1, 1]} : vector<16x128xf32> to vector<1x128xf32>
    %142 = vector.broadcast %140 : vector<2x1xf32> to vector<2x128xf32>
    %143 = vector.broadcast %141 : vector<1x128xf32> to vector<2x128xf32>
    %144 = arith.mulf %142, %143 : vector<2x128xf32>
    %145 = arith.addf %139, %144 : vector<2x128xf32>
    %146 = vector.extract_strided_slice %131 {offsets = [0, 2], sizes = [2, 1], strides = [1, 1]} : vector<2x16xf32> to vector<2x1xf32>
    %147 = vector.extract_strided_slice %130 {offsets = [2, 0], sizes = [1, 128], strides = [1, 1]} : vector<16x128xf32> to vector<1x128xf32>
    %148 = vector.broadcast %146 : vector<2x1xf32> to vector<2x128xf32>
    %149 = vector.broadcast %147 : vector<1x128xf32> to vector<2x128xf32>
    %150 = arith.mulf %148, %149 : vector<2x128xf32>
    %151 = arith.addf %145, %150 : vector<2x128xf32>
    %152 = vector.extract_strided_slice %131 {offsets = [0, 3], sizes = [2, 1], strides = [1, 1]} : vector<2x16xf32> to vector<2x1xf32>
    %153 = vector.extract_strided_slice %130 {offsets = [3, 0], sizes = [1, 128], strides = [1, 1]} : vector<16x128xf32> to vector<1x128xf32>
    %154 = vector.broadcast %152 : vector<2x1xf32> to vector<2x128xf32>
    %155 = vector.broadcast %153 : vector<1x128xf32> to vector<2x128xf32>
    %156 = arith.mulf %154, %155 : vector<2x128xf32>
    %157 = arith.addf %151, %156 : vector<2x128xf32>
    %158 = vector.extract_strided_slice %131 {offsets = [0, 4], sizes = [2, 1], strides = [1, 1]} : vector<2x16xf32> to vector<2x1xf32>
    %159 = vector.extract_strided_slice %130 {offsets = [4, 0], sizes = [1, 128], strides = [1, 1]} : vector<16x128xf32> to vector<1x128xf32>
    %160 = vector.broadcast %158 : vector<2x1xf32> to vector<2x128xf32>
    %161 = vector.broadcast %159 : vector<1x128xf32> to vector<2x128xf32>
    %162 = arith.mulf %160, %161 : vector<2x128xf32>
    %163 = arith.addf %157, %162 : vector<2x128xf32>
    %164 = vector.extract_strided_slice %131 {offsets = [0, 5], sizes = [2, 1], strides = [1, 1]} : vector<2x16xf32> to vector<2x1xf32>
    %165 = vector.extract_strided_slice %130 {offsets = [5, 0], sizes = [1, 128], strides = [1, 1]} : vector<16x128xf32> to vector<1x128xf32>
    %166 = vector.broadcast %164 : vector<2x1xf32> to vector<2x128xf32>
    %167 = vector.broadcast %165 : vector<1x128xf32> to vector<2x128xf32>
    %168 = arith.mulf %166, %167 : vector<2x128xf32>
    %169 = arith.addf %163, %168 : vector<2x128xf32>
    %170 = vector.extract_strided_slice %131 {offsets = [0, 6], sizes = [2, 1], strides = [1, 1]} : vector<2x16xf32> to vector<2x1xf32>
    %171 = vector.extract_strided_slice %130 {offsets = [6, 0], sizes = [1, 128], strides = [1, 1]} : vector<16x128xf32> to vector<1x128xf32>
    %172 = vector.broadcast %170 : vector<2x1xf32> to vector<2x128xf32>
    %173 = vector.broadcast %171 : vector<1x128xf32> to vector<2x128xf32>
    %174 = arith.mulf %172, %173 : vector<2x128xf32>
    %175 = arith.addf %169, %174 : vector<2x128xf32>
    %176 = vector.extract_strided_slice %131 {offsets = [0, 7], sizes = [2, 1], strides = [1, 1]} : vector<2x16xf32> to vector<2x1xf32>
    %177 = vector.extract_strided_slice %130 {offsets = [7, 0], sizes = [1, 128], strides = [1, 1]} : vector<16x128xf32> to vector<1x128xf32>
    %178 = vector.broadcast %176 : vector<2x1xf32> to vector<2x128xf32>
    %179 = vector.broadcast %177 : vector<1x128xf32> to vector<2x128xf32>
    %180 = arith.mulf %178, %179 : vector<2x128xf32>
    %181 = arith.addf %175, %180 : vector<2x128xf32>
    %182 = vector.extract_strided_slice %131 {offsets = [0, 8], sizes = [2, 1], strides = [1, 1]} : vector<2x16xf32> to vector<2x1xf32>
    %183 = vector.extract_strided_slice %130 {offsets = [8, 0], sizes = [1, 128], strides = [1, 1]} : vector<16x128xf32> to vector<1x128xf32>
    %184 = vector.broadcast %182 : vector<2x1xf32> to vector<2x128xf32>
    %185 = vector.broadcast %183 : vector<1x128xf32> to vector<2x128xf32>
    %186 = arith.mulf %184, %185 : vector<2x128xf32>
    %187 = arith.addf %181, %186 : vector<2x128xf32>
    %188 = vector.extract_strided_slice %131 {offsets = [0, 9], sizes = [2, 1], strides = [1, 1]} : vector<2x16xf32> to vector<2x1xf32>
    %189 = vector.extract_strided_slice %130 {offsets = [9, 0], sizes = [1, 128], strides = [1, 1]} : vector<16x128xf32> to vector<1x128xf32>
    %190 = vector.broadcast %188 : vector<2x1xf32> to vector<2x128xf32>
    %191 = vector.broadcast %189 : vector<1x128xf32> to vector<2x128xf32>
    %192 = arith.mulf %190, %191 : vector<2x128xf32>
    %193 = arith.addf %187, %192 : vector<2x128xf32>
    %194 = vector.extract_strided_slice %131 {offsets = [0, 10], sizes = [2, 1], strides = [1, 1]} : vector<2x16xf32> to vector<2x1xf32>
    %195 = vector.extract_strided_slice %130 {offsets = [10, 0], sizes = [1, 128], strides = [1, 1]} : vector<16x128xf32> to vector<1x128xf32>
    %196 = vector.broadcast %194 : vector<2x1xf32> to vector<2x128xf32>
    %197 = vector.broadcast %195 : vector<1x128xf32> to vector<2x128xf32>
    %198 = arith.mulf %196, %197 : vector<2x128xf32>
    %199 = arith.addf %193, %198 : vector<2x128xf32>
    %200 = vector.extract_strided_slice %131 {offsets = [0, 11], sizes = [2, 1], strides = [1, 1]} : vector<2x16xf32> to vector<2x1xf32>
    %201 = vector.extract_strided_slice %130 {offsets = [11, 0], sizes = [1, 128], strides = [1, 1]} : vector<16x128xf32> to vector<1x128xf32>
    %202 = vector.broadcast %200 : vector<2x1xf32> to vector<2x128xf32>
    %203 = vector.broadcast %201 : vector<1x128xf32> to vector<2x128xf32>
    %204 = arith.mulf %202, %203 : vector<2x128xf32>
    %205 = arith.addf %199, %204 : vector<2x128xf32>
    %206 = vector.extract_strided_slice %131 {offsets = [0, 12], sizes = [2, 1], strides = [1, 1]} : vector<2x16xf32> to vector<2x1xf32>
    %207 = vector.extract_strided_slice %130 {offsets = [12, 0], sizes = [1, 128], strides = [1, 1]} : vector<16x128xf32> to vector<1x128xf32>
    %208 = vector.broadcast %206 : vector<2x1xf32> to vector<2x128xf32>
    %209 = vector.broadcast %207 : vector<1x128xf32> to vector<2x128xf32>
    %210 = arith.mulf %208, %209 : vector<2x128xf32>
    %211 = arith.addf %205, %210 : vector<2x128xf32>
    %212 = vector.extract_strided_slice %131 {offsets = [0, 13], sizes = [2, 1], strides = [1, 1]} : vector<2x16xf32> to vector<2x1xf32>
    %213 = vector.extract_strided_slice %130 {offsets = [13, 0], sizes = [1, 128], strides = [1, 1]} : vector<16x128xf32> to vector<1x128xf32>
    %214 = vector.broadcast %212 : vector<2x1xf32> to vector<2x128xf32>
    %215 = vector.broadcast %213 : vector<1x128xf32> to vector<2x128xf32>
    %216 = arith.mulf %214, %215 : vector<2x128xf32>
    %217 = arith.addf %211, %216 : vector<2x128xf32>
    %218 = vector.extract_strided_slice %131 {offsets = [0, 14], sizes = [2, 1], strides = [1, 1]} : vector<2x16xf32> to vector<2x1xf32>
    %219 = vector.extract_strided_slice %130 {offsets = [14, 0], sizes = [1, 128], strides = [1, 1]} : vector<16x128xf32> to vector<1x128xf32>
    %220 = vector.broadcast %218 : vector<2x1xf32> to vector<2x128xf32>
    %221 = vector.broadcast %219 : vector<1x128xf32> to vector<2x128xf32>
    %222 = arith.mulf %220, %221 : vector<2x128xf32>
    %223 = arith.addf %217, %222 : vector<2x128xf32>
    %224 = vector.extract_strided_slice %131 {offsets = [0, 15], sizes = [2, 1], strides = [1, 1]} : vector<2x16xf32> to vector<2x1xf32>
    %225 = vector.extract_strided_slice %130 {offsets = [15, 0], sizes = [1, 128], strides = [1, 1]} : vector<16x128xf32> to vector<1x128xf32>
    %226 = vector.broadcast %224 : vector<2x1xf32> to vector<2x128xf32>
    %227 = vector.broadcast %225 : vector<1x128xf32> to vector<2x128xf32>
    %228 = arith.mulf %226, %227 : vector<2x128xf32>
    %229 = arith.addf %223, %228 : vector<2x128xf32>
    %cst_14 = arith.constant -3.000000e+01 : f32
    %cst_15 = arith.constant 3.000000e+01 : f32
    %230 = vector.broadcast %cst_14 : f32 to vector<2x128xf32>
    %231 = arith.maximumf %230, %229 : vector<2x128xf32>
    %232 = vector.broadcast %cst_15 : f32 to vector<2x128xf32>
    %233 = arith.minimumf %232, %231 : vector<2x128xf32>
    %cst_16 = arith.constant 0.000000e+00 : f32
    %234 = vector.broadcast %cst_16 : f32 to vector<2x128xf32>
    %235 = arith.subf %234, %233 : vector<2x128xf32>
    %236 = math.exp %235 : vector<2x128xf32>
    %cst_17 = arith.constant 1.000000e+00 : f32
    %237 = vector.broadcast %cst_17 : f32 to vector<2x128xf32>
    %238 = arith.addf %237, %236 : vector<2x128xf32>
    %239 = tpu.reciprocal %238 : vector<2x128xf32> -> vector<2x128xf32>
    %cst_18 = arith.constant 1.000000e+02 : f32
    %240 = vector.broadcast %cst_18 : f32 to vector<2x128xf32>
    %241 = arith.mulf %240, %239 : vector<2x128xf32>
    %c0_19 = arith.constant 0 : index
    %c0_20 = arith.constant 0 : index
    %242 = vector.load %arg8[%c0_19, %c0_20] : memref<2x128xf32, #tpu.memory_space<vmem>>, vector<2x128xf32>
    tpu.vector_store %arg8[%c0_19, %c0_20], %241 {strides = array<i32>} : memref<2x128xf32, #tpu.memory_space<vmem>>, vector<2x128xf32>,
    return
  }
  func.func @transform_0(%arg0: i32) -> (i32, i32) {
    %c0_i32 = arith.constant 0 : i32
    %c0_i32_0 = arith.constant 0 : i32
    return %c0_i32, %arg0 : i32, i32
  }
  func.func @transform_1(%arg0: i32) -> (i32, i32) {
    %c0_i32 = arith.constant 0 : i32
    %c0_i32_0 = arith.constant 0 : i32
    %c0_i32_1 = arith.constant 0 : i32
    return %c0_i32, %c0_i32_0 : i32, i32
  }
  func.func @transform_2(%arg0: i32) -> (i32, i32) {
    %c0_i32 = arith.constant 0 : i32
    %c0_i32_0 = arith.constant 0 : i32
    %c0_i32_1 = arith.constant 0 : i32
    return %c0_i32, %c0_i32_0 : i32, i32
  }
  func.func @transform_3(%arg0: i32) -> (i32, i32) {
    %c0_i32 = arith.constant 0 : i32
    %c0_i32_0 = arith.constant 0 : i32
    %c0_i32_1 = arith.constant 0 : i32
    return %c0_i32, %c0_i32_0 : i32, i32
  }
  func.func @transform_4(%arg0: i32) -> (i32, i32) {
    %c0_i32 = arith.constant 0 : i32
    %c0_i32_0 = arith.constant 0 : i32
    %c0_i32_1 = arith.constant 0 : i32
    return %c0_i32, %c0_i32_0 : i32, i32
  }
  func.func @transform_5(%arg0: i32) -> (i32, i32) {
    %c0_i32 = arith.constant 0 : i32
    %c0_i32_0 = arith.constant 0 : i32
    %c0_i32_1 = arith.constant 0 : i32
    return %c0_i32, %c0_i32_0 : i32, i32
  }
  func.func @transform_6(%arg0: i32) -> (i32, i32) {
    %c0_i32 = arith.constant 0 : i32
    %c0_i32_0 = arith.constant 0 : i32
    %c0_i32_1 = arith.constant 0 : i32
    return %c0_i32, %c0_i32_0 : i32, i32
  }
  func.func @transform_7(%arg0: i32) -> (i32, i32) {
    %c0_i32 = arith.constant 0 : i32
    %c0_i32_0 = arith.constant 0 : i32
    return %c0_i32, %arg0 : i32, i32
  }
}

</mosaic_0001>

<bundles_post_ra>
// kernel: tpu_custom_call.1
= control target key start
LH: loop header
LB: loop body
LE: loop exit
PB: predicated region body
PF: predicated region fallthrough
CT: control target
= control target key end

     0   :  { %v586_v2 = vmov 1   ;;  %v587_v3 = vmov 0   ;;  %s802_s0 = inlined_call_operand.vmem [shape: f32[4,128], index: 0, kind: input, shape index: {}]   ;;  %s803_s1 = inlined_call_operand.vmem [shape: f32[16,4], index: 1, kind: input, shape index: {}]   ;;  %s804_s2 = inlined_call_operand.vmem [shape: f32[16,1], index: 2, kind: input, shape index: {}]   ;;  %s805_s3 = inlined_call_operand.vmem [shape: f32[16,16], index: 3, kind: input, shape index: {}]   ;;  %s806_s4 = inlined_call_operand.vmem [shape: f32[16,1], index: 4, kind: input, shape index: {}]   ;;  %s807_s5 = inlined_call_operand.vmem [shape: f32[2,16], index: 5, kind: input, shape index: {}]   ;;  %s808_s6 = inlined_call_operand.vmem [shape: f32[2,1], index: 6, kind: input, shape index: {}]   ;;  %s809_s7 = inlined_call_operand.hbm [shape: f32[2,128], index: 7, kind: output, shape index: {}]  }
   0x1   :  { %v30_v0 = vld [vmem:[%s804_s2] sm:$0xff]  ;;  %502 = vset.pattern.permute.xlu2 %v586_v2  ;;  %501 = vset.pattern.permute.xlu1 %v587_v3 }
   0x2   :  { %v28_v1 = vld [vmem:[%s803_s1] sm:$0xff]  ;;  %500 = vset.pattern.permute.xlu0 %v587_v3  ;;  %47 = vperm.xlu1 %501, %v30_v0  }
   0x3   :  { %12 = vsyncpa [#allocation3], 0  ;;  %58 = vperm.xlu2 %502, %v28_v1   ;;  %34 = vperm.xlu0 %500, %v28_v1   ;;  %v31_v4 = vld [vmem:[%s804_s2 + $0x8] sm:$0xff]  ;;  %v588_v7 = vmov 2   ;;  %v589_v8 = vmov 3   ;;  %v668_v9 = vld [vmem:[%s805_s3] sm:$0xff] }
   0x4   :  { %v29_v5 = vld [vmem:[%s803_s1 + $0x8] sm:$0xff]  ;;  %v100_v11 = vld [vmem:[%s806_s4] sm:$0xff]  ;;  %v590_v12 = vmov 4   ;;  %v591_v13 = vmov 7   ;;  %v592_v14 = vmov 9   ;;  %v593_v15 = vmov 12  }
   0x5   :  { %v661_v6 = vld [vmem:[%s805_s3 + $0x8] sm:$0xff]  ;;  %v594_v16 = vmov 5   ;;  %v595_v17 = vmov 14   ;;  %v596_v18 = vmov 6   ;;  %v597_v19 = vmov 8   ;;  %s473_s20 = sshll.u32 %s809_s7, 4  ;;  %s474_s20 = int_to_ptr.hbm [resolvable:$true] %s473_s20 }
   0x6   :  { %v101_v10 = vld [vmem:[%s806_s4 + $0x8] sm:$0xff]  ;;  %v715_v21 = vld [vmem:[%s807_s5] sm:$0x3]  ;;  %v598_v23 = vmov 10   ;;  %v599_v28 = vmov 11   ;;  %v600_v37 = vmov 15  }
   0x7   :  { %v27_v25 = vld [vmem:[%s802_s0] sm:$0xf]  ;;  %v601_v40 = vmov 13  }
   0x8   :  { %v65_v26 = vperm.slane %v27_v25, 1  ;;  %v42_v27 = vperm.slane %v27_v25, 0  ;;  %v78_v45 = vperm.slane %v27_v25, 2  ;;  %v91_v51 = vperm.slane %v27_v25, 3 }
   0xa   :  { %52 = vperm.xlu1 %501, %v31_v4  }
   0xb   :  { %62 = vperm.xlu2 %502, %v29_v5   ;;  %39 = vperm.xlu0 %500, %v29_v5  }
  0x12   :  { %503 = vset.pattern.permute.xlu1 %v588_v7 }
  0x13   :  { %504 = vset.pattern.permute.xlu2 %v589_v8  ;;  %109 = vperm.xlu0 %500, %v661_v6  }
  0x14   :  { %75 = vperm.xlu1 %503, %v29_v5   ;;  %84 = vperm.xlu2 %504, %v28_v1  }
  0x1b   :  { %507 = vset.pattern.permute.xlu0 %v588_v7 }
  0x1c   :  { %505 = vset.pattern.permute.xlu1 %v589_v8  ;;  %506 = vset.pattern.permute.xlu2 %v587_v3 }
  0x1d   :  { %71 = vperm.xlu0 %507, %v28_v1   ;;  %88 = vperm.xlu1 %505, %v29_v5   ;;  %v325_v1 = vld [vmem:[%s808_s6] sm:$0x3]  ;;  %s602_s6 = smov [#allocation2]  }
  0x1e   :  { %104 = vperm.xlu2 %506, %v668_v9   ;;  %s471_s17 = sshll.u32 %s602_s6, 4  ;;  %s472_s17 = int_to_ptr.vmem [resolvable:$true] %s471_s17 }
  0x25   :  { %141 = vperm.xlu0 %507, %v668_v9   ;;  %508 = vset.pattern.permute.xlu1 %v587_v3 }
  0x26   :  { %122 = vperm.xlu2 %506, %v101_v10   ;;  %117 = vperm.xlu1 %508, %v100_v11  }
  0x2d   :  { %515 = vset.pattern.permute.xlu0 %v590_v12 }
  0x2e   :  { %510 = vset.pattern.permute.xlu2 %v586_v2  ;;  %171 = vperm.xlu0 %515, %v661_v6  }
  0x2f   :  { %509 = vset.pattern.permute.xlu1 %v586_v2  ;;  %132 = vperm.xlu2 %510, %v661_v6  }
  0x30   :  { %128 = vperm.xlu1 %509, %v668_v9  }
  0x36   :  { %520 = vset.pattern.permute.xlu0 %v591_v13 }
  0x37   :  { %512 = vset.pattern.permute.xlu2 %v589_v8  ;;  %206 = vperm.xlu0 %520, %v668_v9  }
  0x38   :  { %511 = vset.pattern.permute.xlu1 %v588_v7  ;;  %154 = vperm.xlu2 %512, %v668_v9  }
  0x39   :  { %145 = vperm.xlu1 %511, %v661_v6  }
  0x3f   :  { %525 = vset.pattern.permute.xlu0 %v592_v14 }
  0x40   :  { %514 = vset.pattern.permute.xlu2 %v590_v12  ;;  %236 = vperm.xlu0 %525, %v661_v6  }
  0x41   :  { %513 = vset.pattern.permute.xlu1 %v589_v8  ;;  %167 = vperm.xlu2 %514, %v668_v9  }
  0x42   :  { %158 = vperm.xlu1 %513, %v661_v6  }
  0x48   :  { %530 = vset.pattern.permute.xlu0 %v593_v15 }
  0x49   :  { %517 = vset.pattern.permute.xlu2 %v594_v16  ;;  %271 = vperm.xlu0 %530, %v668_v9  }
  0x4a   :  { %516 = vset.pattern.permute.xlu1 %v594_v16  ;;  %184 = vperm.xlu2 %517, %v661_v6  }
  0x4b   :  { %180 = vperm.xlu1 %516, %v668_v9  }
  0x51   :  { %535 = vset.pattern.permute.xlu0 %v595_v17 }
  0x52   :  { %519 = vset.pattern.permute.xlu2 %v596_v18  ;;  %301 = vperm.xlu0 %535, %v661_v6  }
  0x53   :  { %518 = vset.pattern.permute.xlu1 %v596_v18  ;;  %197 = vperm.xlu2 %519, %v661_v6  }
  0x54   :  { %193 = vperm.xlu1 %518, %v668_v9  }
  0x5a   :  { %540 = vset.pattern.permute.xlu0 %v588_v7 }
  0x5b   :  { %522 = vset.pattern.permute.xlu2 %v597_v19  ;;  %347 = vperm.xlu0 %540, %v715_v21  }
  0x5c   :  { %521 = vset.pattern.permute.xlu1 %v591_v13  ;;  %219 = vperm.xlu2 %522, %v668_v9  }
  0x5d   :  { %210 = vperm.xlu1 %521, %v661_v6   ;;  %v59_v20 = vpop.permute.xlu2 %58 }
  0x5e   :  { %v66_v31 = vmul.f32 %v65_v26, %v59_v20 }
  0x63   :  { %545 = vset.pattern.permute.xlu0 %v596_v18 }
  0x64   :  { %524 = vset.pattern.permute.xlu2 %v592_v14  ;;  %375 = vperm.xlu0 %545, %v715_v21  }
  0x65   :  { %523 = vset.pattern.permute.xlu1 %v597_v19  ;;  %232 = vperm.xlu2 %524, %v668_v9   ;;  %v63_v22 = vpop.permute.xlu2 %62 }
  0x66   :  { %223 = vperm.xlu1 %523, %v661_v6   ;;  %v67_v41 = vmul.f32 %v65_v26, %v63_v22 }
  0x6c   :  { %550 = vset.pattern.permute.xlu0 %v599_v28 }
  0x6d   :  { %527 = vset.pattern.permute.xlu2 %v598_v23  ;;  %410 = vperm.xlu0 %550, %v715_v21  }
  0x6e   :  { %526 = vset.pattern.permute.xlu1 %v598_v23  ;;  %249 = vperm.xlu2 %527, %v661_v6   ;;  %v85_v24 = vpop.permute.xlu2 %84 }
  0x6f   :  { %245 = vperm.xlu1 %526, %v668_v9   ;;  %v92_v56 = vmul.f32 %v91_v51, %v85_v24 }
  0x74   :  { %v48_v29 = vpop.permute.xlu1 %47 }
  0x75   :  { %v35_v30 = vpop.permute.xlu0 %34  ;;  %555 = vset.pattern.permute.xlu0 %v600_v37 }
  0x76   :  { %529 = vset.pattern.permute.xlu2 %v599_v28  ;;  %v43_v32 = vmul.f32 %v42_v27, %v35_v30 }
  0x77   :  { %528 = vset.pattern.permute.xlu1 %v599_v28  ;;  %262 = vperm.xlu2 %529, %v661_v6  }
  0x78   :  { %v55_v33 = vadd.f32 %v48_v29, %v43_v32  ;;  %258 = vperm.xlu1 %528, %v668_v9   ;;  %v105_v34 = vpop.permute.xlu2 %104 }
  0x7a   :  { %v68_v35 = vadd.f32 %v66_v31, %v55_v33 }
  0x7c   :  { %v53_v36 = vpop.permute.xlu1 %52 }
  0x7d   :  { %v40_v38 = vpop.permute.xlu0 %39 }
  0x7e   :  { %v44_v39 = vmul.f32 %v42_v27, %v40_v38 }
  0x7f   :  { %532 = vset.pattern.permute.xlu2 %v601_v40 }
  0x80   :  { %v56_v42 = vadd.f32 %v53_v36, %v44_v39  ;;  %531 = vset.pattern.permute.xlu1 %v593_v15  ;;  %284 = vperm.xlu2 %532, %v668_v9   ;;  %v123_v43 = vpop.permute.xlu2 %122 }
  0x81   :  { %275 = vperm.xlu1 %531, %v661_v6  }
  0x82   :  { %v69_v44 = vadd.f32 %v67_v41, %v56_v42 }
  0x85   :  { %v110_v46 = vpop.permute.xlu0 %109 }
  0x86   :  { %v76_v47 = vpop.permute.xlu1 %75 }
  0x87   :  { %v80_v48 = vmul.f32 %v78_v45, %v76_v47 }
  0x88   :  { %534 = vset.pattern.permute.xlu2 %v595_v17 }
  0x89   :  { %v82_v49 = vadd.f32 %v80_v48, %v69_v44  ;;  %533 = vset.pattern.permute.xlu1 %v601_v40  ;;  %297 = vperm.xlu2 %534, %v668_v9   ;;  %v133_v50 = vpop.permute.xlu2 %132 }
  0x8a   :  { %288 = vperm.xlu1 %533, %v661_v6  }
  0x8f   :  { %v72_v52 = vpop.permute.xlu0 %71  ;;  %v89_v53 = vpop.permute.xlu1 %88 }
  0x90   :  { %v79_v54 = vmul.f32 %v78_v45, %v72_v52  ;;  %v93_v55 = vmul.f32 %v91_v51, %v89_v53 }
  0x91   :  { %537 = vset.pattern.permute.xlu2 %v587_v3 }
  0x92   :  { %v81_v57 = vadd.f32 %v79_v54, %v68_v35  ;;  %v743_v58 = vadd.f32 %v93_v55, %v82_v49  ;;  %536 = vset.pattern.permute.xlu1 %v600_v37  ;;  %328 = vperm.xlu2 %537, %v715_v21   ;;  %v155_v59 = vpop.permute.xlu2 %154 }
  0x93   :  { %310 = vperm.xlu1 %536, %v668_v9  }
  0x94   :  { %v94_v60 = vadd.f32 %v92_v56, %v81_v57  ;;  %v780_v51 = vmax.f32 %v743_v58, 0.0 }
  0x96   :  { %v748_v61 = vmax.f32 %v94_v60, 0.0  ;;  %v226_v56 = vperm.slane %v780_v51, 0  ;;  %v239_v58 = vperm.slane %v780_v51, 1 }
  0x97   :  { %v142_v27 = vpop.permute.xlu0 %141 }
  0x98   :  { %v161_v62 = vperm.slane %v748_v61, 3  ;;  %v118_v63 = vpop.permute.xlu1 %117  ;;  %v112_v0 = vperm.slane %v748_v61, 0  ;;  %v135_v4 = vperm.slane %v748_v61, 1  ;;  %v174_v9 = vperm.slane %v748_v61, 4 }
  0x99   :  { %v148_v26 = vperm.slane %v748_v61, 2  ;;  %v200_v39 = vperm.slane %v748_v61, 6  ;;  %v213_v54 = vperm.slane %v748_v61, 7 }
  0x9a   :  { %v162_v5 = vmul.f32 %v161_v62, %v155_v59  ;;  %v113_v7 = vmul.f32 %v112_v0, %v105_v34  ;;  %v114_v10 = vmul.f32 %v112_v0, %v110_v46  ;;  %539 = vset.pattern.permute.xlu2 %v586_v2  ;;  %v137_v18 = vmul.f32 %v135_v4, %v133_v50 }
  0x9b   :  { %538 = vset.pattern.permute.xlu1 %v587_v3  ;;  %340 = vperm.xlu2 %539, %v715_v21   ;;  %v168_v11 = vpop.permute.xlu2 %167  ;;  %v187_v2 = vperm.slane %v748_v61, 5  ;;  %v149_v30 = vmul.f32 %v148_v26, %v142_v27 }
  0x9c   :  { %v125_v20 = vadd.f32 %v118_v63, %v113_v7  ;;  %v175_v22 = vmul.f32 %v174_v9, %v168_v11  ;;  %335 = vperm.xlu1 %538, %v325_v1   ;;  %v126_v24 = vadd.f32 %v123_v43, %v114_v10  ;;  %v252_v11 = vperm.slane %v780_v51, 2 }
  0x9e   :  { %v139_v25 = vadd.f32 %v137_v18, %v126_v24 }
  0xa0   :  { %v172_v42 = vpop.permute.xlu0 %171 }
  0xa1   :  { %v176_v45 = vmul.f32 %v174_v9, %v172_v42 }
  0xa2   :  { %v129_v28 = vpop.permute.xlu1 %128 }
  0xa3   :  { %v136_v29 = vmul.f32 %v135_v4, %v129_v28  ;;  %542 = vset.pattern.permute.xlu2 %v600_v37 }
  0xa4   :  { %541 = vset.pattern.permute.xlu1 %v589_v8  ;;  %314 = vperm.xlu2 %542, %v661_v6   ;;  %v185_v3 = vpop.permute.xlu2 %184 }
  0xa5   :  { %v138_v31 = vadd.f32 %v136_v29, %v125_v20  ;;  %v189_v32 = vmul.f32 %v187_v2, %v185_v3  ;;  %354 = vperm.xlu1 %541, %v715_v21   ;;  %v278_v3 = vperm.slane %v780_v51, 4 }
  0xa7   :  { %v151_v33 = vadd.f32 %v149_v30, %v138_v31 }
  0xa9   :  { %v164_v34 = vadd.f32 %v162_v5, %v151_v33  ;;  %v207_v52 = vpop.permute.xlu0 %206  ;;  %v291_v33 = vperm.slane %v780_v51, 5 }
  0xab   :  { %v146_v35 = vpop.permute.xlu1 %145  ;;  %v177_v36 = vadd.f32 %v175_v22, %v164_v34  ;;  %v265_v22 = vperm.slane %v780_v51, 3 }
  0xac   :  { %v150_v38 = vmul.f32 %v148_v26, %v146_v35  ;;  %544 = vset.pattern.permute.xlu2 %v594_v16  ;;  %v304_v35 = vperm.slane %v780_v51, 6 }
  0xad   :  { %543 = vset.pattern.permute.xlu1 %v590_v12  ;;  %368 = vperm.xlu2 %544, %v715_v21   ;;  %v198_v6 = vpop.permute.xlu2 %197 }
  0xae   :  { %v152_v8 = vadd.f32 %v150_v38, %v139_v25  ;;  %v202_v41 = vmul.f32 %v200_v39, %v198_v6  ;;  %361 = vperm.xlu1 %543, %v715_v21  }
  0xb2   :  { %v237_v4 = vpop.permute.xlu0 %236 }
  0xb3   :  { %v241_v9 = vmul.f32 %v239_v58, %v237_v4 }
  0xb4   :  { %v159_v43 = vpop.permute.xlu1 %158 }
  0xb5   :  { %v163_v44 = vmul.f32 %v161_v62, %v159_v43  ;;  %547 = vset.pattern.permute.xlu2 %v597_v19 }
  0xb6   :  { %546 = vset.pattern.permute.xlu1 %v591_v13  ;;  %389 = vperm.xlu2 %547, %v715_v21   ;;  %v220_v16 = vpop.permute.xlu2 %219 }
  0xb7   :  { %v165_v46 = vadd.f32 %v163_v44, %v152_v8  ;;  %382 = vperm.xlu1 %546, %v715_v21   ;;  %v227_v59 = vmul.f32 %v226_v56, %v220_v16 }
  0xb9   :  { %v178_v12 = vadd.f32 %v176_v45, %v165_v46 }
  0xbb   :  { %v191_v47 = vadd.f32 %v189_v32, %v178_v12 }
  0xbd   :  { %v181_v48 = vpop.permute.xlu1 %180  ;;  %v204_v49 = vadd.f32 %v202_v41, %v191_v47 }
  0xbe   :  { %v188_v50 = vmul.f32 %v187_v2, %v181_v48  ;;  %549 = vset.pattern.permute.xlu2 %v598_v23  ;;  %v214_v23 = vmul.f32 %v213_v54, %v207_v52 }
  0xbf   :  { %548 = vset.pattern.permute.xlu1 %v592_v14  ;;  %403 = vperm.xlu2 %549, %v715_v21   ;;  %v233_v19 = vpop.permute.xlu2 %232 }
  0xc0   :  { %v190_v13 = vadd.f32 %v188_v50, %v177_v36  ;;  %396 = vperm.xlu1 %548, %v715_v21   ;;  %v240_v62 = vmul.f32 %v239_v58, %v233_v19 }
  0xc6   :  { %v194_v53 = vpop.permute.xlu1 %193 }
  0xc7   :  { %v201_v55 = vmul.f32 %v200_v39, %v194_v53  ;;  %552 = vset.pattern.permute.xlu2 %v601_v40 }
  0xc8   :  { %551 = vset.pattern.permute.xlu1 %v593_v15  ;;  %424 = vperm.xlu2 %552, %v715_v21   ;;  %v250_v14 = vpop.permute.xlu2 %249 }
  0xc9   :  { %v203_v57 = vadd.f32 %v201_v55, %v190_v13  ;;  %417 = vperm.xlu1 %551, %v715_v21   ;;  %v254_v20 = vmul.f32 %v252_v11, %v250_v14 }
  0xcb   :  { %v216_v60 = vadd.f32 %v214_v23, %v203_v57 }
  0xcd   :  { %v229_v61 = vadd.f32 %v227_v59, %v216_v60 }
  0xcf   :  { %v211_v63 = vpop.permute.xlu1 %210  ;;  %v242_v0 = vadd.f32 %v240_v62, %v229_v61 }
  0xd0   :  { %v215_v40 = vmul.f32 %v213_v54, %v211_v63  ;;  %554 = vset.pattern.permute.xlu2 %v600_v37 }
  0xd1   :  { %553 = vset.pattern.permute.xlu1 %v595_v17  ;;  %438 = vperm.xlu2 %554, %v715_v21   ;;  %v263_v15 = vpop.permute.xlu2 %262 }
  0xd2   :  { %v217_v1 = vadd.f32 %v215_v40, %v204_v49  ;;  %431 = vperm.xlu1 %553, %v715_v21   ;;  %v267_v24 = vmul.f32 %v265_v22, %v263_v15  ;;  %v272_v21 = vpop.permute.xlu0 %271  ;;  %v317_v49 = vperm.slane %v780_v51, 7 }
  0xd3   :  { %v279_v32 = vmul.f32 %v278_v3, %v272_v21 }
  0xd8   :  { %v224_v5 = vpop.permute.xlu1 %223 }
  0xd9   :  { %v228_v7 = vmul.f32 %v226_v56, %v224_v5 }
  0xda   :  { %v285_v10 = vpop.permute.xlu2 %284  ;;  %v302_v16 = vpop.permute.xlu0 %301 }
  0xdb   :  { %v230_v18 = vadd.f32 %v228_v7, %v217_v1  ;;  %v292_v36 = vmul.f32 %v291_v33, %v285_v10  ;;  %v306_v47 = vmul.f32 %v304_v35, %v302_v16 }
  0xdd   :  { %v243_v37 = vadd.f32 %v241_v9, %v230_v18 }
  0xdf   :  { %v256_v17 = vadd.f32 %v254_v20, %v243_v37 }
  0xe1   :  { %v246_v25 = vpop.permute.xlu1 %245  ;;  %v269_v26 = vadd.f32 %v267_v24, %v256_v17 }
  0xe2   :  { %v253_v27 = vmul.f32 %v252_v11, %v246_v25 }
  0xe3   :  { %v298_v29 = vpop.permute.xlu2 %297 }
  0xe4   :  { %v255_v28 = vadd.f32 %v253_v27, %v242_v0  ;;  %v305_v39 = vmul.f32 %v304_v35, %v298_v29  ;;  %v348_v0 = vpop.permute.xlu0 %347 }
  0xea   :  { %v259_v2 = vpop.permute.xlu1 %258 }
  0xeb   :  { %v266_v30 = vmul.f32 %v265_v22, %v259_v2 }
  0xec   :  { %v329_v31 = vpop.permute.xlu2 %328  ;;  %v376_v17 = vpop.permute.xlu0 %375 }
  0xed   :  { %v268_v34 = vadd.f32 %v266_v30, %v255_v28 }
  0xef   :  { %v281_v38 = vadd.f32 %v279_v32, %v268_v34 }
  0xf1   :  { %v294_v6 = vadd.f32 %v292_v36, %v281_v38 }
  0xf3   :  { %v276_v8 = vpop.permute.xlu1 %275  ;;  %v307_v41 = vadd.f32 %v305_v39, %v294_v6 }
  0xf4   :  { %v280_v42 = vmul.f32 %v278_v3, %v276_v8  ;;  %v411_v38 = vpop.permute.xlu0 %410 }
  0xf5   :  { %v341_v43 = vpop.permute.xlu2 %340 }
  0xf6   :  { %v282_v44 = vadd.f32 %v280_v42, %v269_v26 }
  0xfc   :  { %v289_v45 = vpop.permute.xlu1 %288 }
  0xfd   :  { %v293_v46 = vmul.f32 %v291_v33, %v289_v45 }
  0xfe   :  { %v315_v12 = vpop.permute.xlu2 %314 }
  0xff   :  { %v295_v48 = vadd.f32 %v293_v46, %v282_v44  ;;  %v319_v19 = vmul.f32 %v317_v49, %v315_v12 }
 0x101   :  { %v308_v50 = vadd.f32 %v306_v47, %v295_v48 }
 0x103   :  { %v321_v13 = vadd.f32 %v319_v19, %v308_v50 }
 0x105   :  { %v311_v52 = vpop.permute.xlu1 %310  ;;  %v323_v22 = vmax.f32 %v321_v13, 0.0 }
 0x106   :  { %v318_v53 = vmul.f32 %v317_v49, %v311_v52 }
 0x107   :  { %v369_v40 = vpop.permute.xlu2 %368  ;;  %v392_v28 = vperm.slane %v323_v22, 0  ;;  %v399_v32 = vperm.slane %v323_v22, 1  ;;  %v413_v34 = vperm.slane %v323_v22, 3  ;;  %v406_v35 = vperm.slane %v323_v22, 2 }
 0x108   :  { %v320_v54 = vadd.f32 %v318_v53, %v307_v41  ;;  %v420_v44 = vperm.slane %v323_v22, 4  ;;  %v427_v45 = vperm.slane %v323_v22, 5  ;;  %v434_v49 = vperm.slane %v323_v22, 6 }
 0x109   :  { %v414_v8 = vmul.f32 %v413_v34, %v411_v38  ;;  %v441_v13 = vperm.slane %v323_v22, 7 }
 0x10a   :  { %v322_v55 = vmax.f32 %v320_v54, 0.0 }
 0x10c   :  { %v331_v23 = vperm.slane %v322_v55, 0  ;;  %v343_v57 = vperm.slane %v322_v55, 1  ;;  %v350_v62 = vperm.slane %v322_v55, 2  ;;  %v357_v63 = vperm.slane %v322_v55, 3 }
 0x10d   :  { %v364_v4 = vperm.slane %v322_v55, 4  ;;  %v371_v5 = vperm.slane %v322_v55, 5  ;;  %v378_v20 = vperm.slane %v322_v55, 6  ;;  %v385_v26 = vperm.slane %v322_v55, 7 }
 0x10e   :  { %v336_v14 = vpop.permute.xlu1 %335  ;;  %v332_v56 = vmul.f32 %v331_v23, %v329_v31  ;;  %v344_v60 = vmul.f32 %v343_v57, %v341_v43  ;;  %v351_v51 = vmul.f32 %v350_v62, %v348_v0 }
 0x10f   :  { %v372_v18 = vmul.f32 %v371_v5, %v369_v40  ;;  %v379_v25 = vmul.f32 %v378_v20, %v376_v17 }
 0x110   :  { %v338_v58 = vadd.f32 %v336_v14, %v332_v56  ;;  %v390_v37 = vpop.permute.xlu2 %389 }
 0x111   :  { %v393_v2 = vmul.f32 %v392_v28, %v390_v37 }
 0x112   :  { %v345_v61 = vadd.f32 %v344_v60, %v338_v58 }
 0x114   :  { %v352_v1 = vadd.f32 %v351_v51, %v345_v61 }
 0x117   :  { %v355_v59 = vpop.permute.xlu1 %354 }
 0x118   :  { %v358_v15 = vmul.f32 %v357_v63, %v355_v59 }
 0x119   :  { %v404_v31 = vpop.permute.xlu2 %403 }
 0x11a   :  { %v359_v10 = vadd.f32 %v358_v15, %v352_v1  ;;  %v407_v39 = vmul.f32 %v406_v35, %v404_v31 }
 0x120   :  { %v362_v7 = vpop.permute.xlu1 %361 }
 0x121   :  { %v365_v9 = vmul.f32 %v364_v4, %v362_v7 }
 0x122   :  { %v425_v43 = vpop.permute.xlu2 %424 }
 0x123   :  { %v366_v11 = vadd.f32 %v365_v9, %v359_v10  ;;  %v428_v12 = vmul.f32 %v427_v45, %v425_v43 }
 0x125   :  { %v373_v24 = vadd.f32 %v372_v18, %v366_v11 }
 0x127   :  { %v380_v29 = vadd.f32 %v379_v25, %v373_v24 }
 0x129   :  { %v383_v27 = vpop.permute.xlu1 %382 }
 0x12a   :  { %v386_v21 = vmul.f32 %v385_v26, %v383_v27 }
 0x12b   :  { %v439_v50 = vpop.permute.xlu2 %438 }
 0x12c   :  { %v387_v3 = vadd.f32 %v386_v21, %v380_v29  ;;  %v442_v53 = vmul.f32 %v441_v13, %v439_v50 }
 0x12e   :  { %v394_v30 = vadd.f32 %v393_v2, %v387_v3 }
 0x132   :  { %v397_v33 = vpop.permute.xlu1 %396 }
 0x133   :  { %v400_v36 = vmul.f32 %v399_v32, %v397_v33 }
 0x135   :  { %v401_v6 = vadd.f32 %v400_v36, %v394_v30 }
 0x137   :  { %v408_v41 = vadd.f32 %v407_v39, %v401_v6 }
 0x139   :  { %v415_v42 = vadd.f32 %v414_v8, %v408_v41 }
 0x13b   :  { %v418_v16 = vpop.permute.xlu1 %417 }
 0x13c   :  { %v421_v46 = vmul.f32 %v420_v44, %v418_v16 }
 0x13e   :  { %v422_v47 = vadd.f32 %v421_v46, %v415_v42 }
 0x140   :  { %v429_v48 = vadd.f32 %v428_v12, %v422_v47 }
 0x144   :  { %v432_v19 = vpop.permute.xlu1 %431 }
 0x145   :  { %v435_v52 = vmul.f32 %v434_v49, %v432_v19 }
 0x147   :  { %v436_v54 = vadd.f32 %v435_v52, %v429_v48 }
 0x149   :  { %v443_v55 = vadd.f32 %v442_v53, %v436_v54 }
 0x14b   :  { %v482_v14 = vclamps-f32 %v443_v55, 30.0 }
 0x14d   :  { %v446_v23 = vsub.f32 0.0, %v482_v14 }
 0x14f   :  { %v447_v56 = vmul.f32 1.442695, %v446_v23 }
 0x151   :  { %556 = vpow2.f32 %v447_v56 }
 0x157   :  { %v557_v57 = vpop.eup %556 }
 0x158   :  { %v449_v58 = vadd.f32 1.0, %v557_v57 }
 0x15a   :  { %558 = vrcp.f32 %v449_v58  ;;  %v461_v61 = vand.u32 2147483648, %v449_v58  ;;  %v459_v0 = vand.u32 2147483647, %v449_v58  ;;  %vm455_vm1 = vweird.f32 %v449_v58 }
 0x15c   :  { %v462_v51 = vor.u32 1.1754944e-38, %v461_v61  ;;  %vm460_vm3 = vcmp.eq.f32.partialorder %v459_v0, 8.507059e+37 }
 0x160   :  { %v559_v59 = vpop.eup %558 }
 0x161   :  { %v451_v60 = vmul.f32 %v559_v59, %v449_v58  ;;  %vm456_vm0 = vweird.f32 %v559_v59 }
 0x162   :  { %vm457_vm2 = vmor %vm455_vm1, %vm456_vm0 }
 0x163   :  { %v452_v62 = vsub.f32 1.0, %v451_v60 }
 0x165   :  { %v453_v63 = vmul.f32 %v559_v59, %v452_v62 }
 0x167   :  { %v454_v40 = vadd.f32 %v559_v59, %v453_v63 }
 0x169   :  { %v458_v15 = vsel %vm457_vm2, %v559_v59, %v454_v40 }
 0x16a   :  { %v463_v1 = vsel %vm460_vm3, %v462_v51, %v458_v15 }
 0x16b   :  { %v464_v4 = vmul.f32 100.0, %v463_v1 }
 0x16d   :  { %465 = vst [vmem:[#allocation2] sm:$0x3] %v464_v4 }
 0x16e   :  { %476 = dma.vmem_to_hbm [thread:$0]  %s472_s17, 32, %s474_s20, [#allocation3]  }
 0x16f   :  { %584 = dma.done.wait [#allocation3], 32  }
 0x170   :  { %585 = vsyncadd [#allocation3], 4294967264 }
 0x171   :  { %481 = vsyncpa [#allocation3], 1 }

</bundles_post_ra>
